<compile_context>
chip_gen: v6e
topology: v6e:2x2x1
jax: 0.10.0
libtpu: 0.0.40
codegen_flags: <defaults>
</compile_context>

<pallas_src>
import functools
import math

import numpy as np

import jax
import jax.numpy as jnp
from jax.experimental import pallas as pl
from jax.experimental.pallas import tpu as pltpu


# ---------------------------------------------------------------------------
# helpers
# ---------------------------------------------------------------------------
def _pick_tile(dim, preferred, base):
    """Largest tile <= preferred that divides `dim` and is a multiple of `base`,
    falling back to the full dimension (a full-extent block is always legal)."""
    if dim <= preferred:
        return dim
    t = (preferred // base) * base
    while t >= base:
        if dim % t == 0:
            return t
        t -= base
    return dim


def _pool_matrix(h, w, out_h=7, out_w=7):
    """(H*W, out_h*out_w) matrix implementing AdaptiveAvgPool2d semantics:
    bin i covers rows [floor(i*H/out), ceil((i+1)*H/out))."""
    def bounds(size, out):
        idx = np.arange(out)
        starts = (idx * size) // out
        ends = -(-((idx + 1) * size) // out)  # ceil division
        return starts, ends

    hs, he = bounds(h, out_h)
    ws, we = bounds(w, out_w)
    p = np.zeros((h * w, out_h * out_w), dtype=np.float32)
    for i in range(out_h):
        for j in range(out_w):
            cnt = float((he[i] - hs[i]) * (we[j] - ws[j]))
            for r in range(hs[i], he[i]):
                for c in range(ws[j], we[j]):
                    p[r * w + c, i * out_w + j] = 1.0 / cnt
    return jnp.asarray(p)


# ---------------------------------------------------------------------------
# kernel 1: adaptive avg-pool (7x7) as a row-tiled matmul against the pool matrix
# ---------------------------------------------------------------------------
def _pool_kernel(x_ref, p_ref, o_ref):
    o_ref[...] = jnp.dot(
        x_ref[...].astype(jnp.float32),
        p_ref[...],
        preferred_element_type=jnp.float32,
    ).astype(o_ref.dtype)


def adaptive_avg_pool_7x7_flatten(x):
    """(N, C, H, W) -> (N, C*49): AdaptiveAvgPool2d((7,7)) + Flatten."""
    n, c, h, w = x.shape
    hw = h * w
    pool_mat = _pool_matrix(h, w)                      # (H*W, 49) f32
    x2d = x.reshape(n * c, hw)
    rows = n * c
    tr = _pick_tile(rows, 256, 8)

    out = pl.pallas_call(
        _pool_kernel,
        out_shape=jax.ShapeDtypeStruct((rows, 49), x.dtype),
        grid_spec=pltpu.PrefetchScalarGridSpec(
            num_scalar_prefetch=0,
            grid=(rows // tr,),
            in_specs=[
                pl.BlockSpec((tr, hw), lambda i: (i, 0)),
                pl.BlockSpec((hw, 49), lambda i: (0, 0)),
            ],
            out_specs=pl.BlockSpec((tr, 49), lambda i: (i, 0)),
        ),
        compiler_params=pltpu.CompilerParams(
            dimension_semantics=("parallel",)),
    )(x2d, pool_mat)
    return out.reshape(n, c * 49)


# ---------------------------------------------------------------------------
# kernel 2: Linear (+ optional fused ReLU), K-tiled with resident f32 accumulator
# ---------------------------------------------------------------------------
def _linear_kernel(x_ref, w_ref, b_ref, o_ref, acc_ref, *, apply_relu):
    k = pl.program_id(1)

    @pl.when(k == 0)
    def _():
        acc_ref[...] = jnp.zeros_like(acc_ref)

    acc_ref[...] += jnp.dot(
        x_ref[...].astype(jnp.float32),
        w_ref[...].astype(jnp.float32),
        preferred_element_type=jnp.float32,
    )

    @pl.when(k == pl.num_programs(1) - 1)
    def _():
        y = acc_ref[...] + b_ref[...].astype(jnp.float32)
        if apply_relu:
            y = jnp.maximum(y, 0.0)
        o_ref[...] = y.astype(o_ref.dtype)


def linear(x, w, b, *, apply_relu, tk=512, tn=1024):
    """y = x @ w + b (w is (in, out)); ReLU fused when apply_relu=True."""
    m, kdim = x.shape
    kw, nout = w.shape
    assert kdim == kw, (kdim, kw)
    tk = _pick_tile(kdim, tk, 128)
    tn = _pick_tile(nout, tn, 128)
    grid = (nout // tn, kdim // tk)

    kernel = functools.partial(_linear_kernel, apply_relu=apply_relu)
    return pl.pallas_call(
        kernel,
        out_shape=jax.ShapeDtypeStruct((m, nout), x.dtype),
        grid_spec=pltpu.PrefetchScalarGridSpec(
            num_scalar_prefetch=0,
            grid=grid,
            in_specs=[
                pl.BlockSpec((m, tk), lambda j, k: (0, k)),     # activations
                pl.BlockSpec((tk, tn), lambda j, k: (k, j)),    # streamed weights
                pl.BlockSpec((1, tn), lambda j, k: (0, j)),     # bias
            ],
            out_specs=pl.BlockSpec((m, tn), lambda j, k: (0, j)),
            scratch_shapes=[pltpu.VMEM((m, tn), jnp.float32)],
        ),
        compiler_params=pltpu.CompilerParams(
            dimension_semantics=("parallel", "arbitrary")),
    )(x, w, b.reshape(1, nout))


# ---------------------------------------------------------------------------
# module
# ---------------------------------------------------------------------------
class Classifier1:
    """JAX/Pallas port of the PyTorch Classifier1 projection head (eval mode)."""

    IN_FEATURES = 512 * 7 * 7   # 25088
    HIDDEN = 4096

    def __init__(self, num_class: int = 152, key=None, dtype=jnp.float32):
        if key is None:
            key = jax.random.PRNGKey(0)
        ks = jax.random.split(key, 6)

        def init_linear(kw, kb, fan_in, fan_out):
            # PyTorch Linear default init: U(-1/sqrt(fan_in), 1/sqrt(fan_in)).
            bound = 1.0 / math.sqrt(fan_in)
            w = jax.random.uniform(kw, (fan_in, fan_out), dtype, -bound, bound)
            b = jax.random.uniform(kb, (fan_out,), dtype, -bound, bound)
            return w, b

        self.w1, self.b1 = init_linear(ks[0], ks[1], self.IN_FEATURES, self.HIDDEN)
        self.w2, self.b2 = init_linear(ks[2], ks[3], self.HIDDEN, self.HIDDEN)
        self.w3, self.b3 = init_linear(ks[4], ks[5], self.HIDDEN, num_class)

    def __call__(self, x):
        # AdaptiveAvgPool2d((7,7)) + Flatten
        h = adaptive_avg_pool_7x7_flatten(x)                       # (N, 25088)
        # Linear + ReLU  (Dropout == identity in eval mode)
        h = linear(h, self.w1, self.b1, apply_relu=True)           # (N, 4096)
        h = linear(h, self.w2, self.b2, apply_relu=True)           # (N, 4096)
        # Final Linear (logits, no activation)
        return linear(h, self.w3, self.b3, apply_relu=False)       # (N, num_class)


# ---------------------------------------------------------------------------
# pure-JAX reference for a sanity check
# ---------------------------------------------------------------------------
def _reference_forward(x, model):
    n, c, h, w = x.shape
    assert h % 7 == 0 and w % 7 == 0  # test shapes only
    kh, kw = h // 7, w // 7
    pooled = x.reshape(n, c, 7, kh, 7, kw).mean(axis=(3, 5))
    flat = pooled.reshape(n, c * 49)
    hp = jax.lax.Precision.HIGHEST
    h1 = jnp.maximum(jnp.dot(flat, model.w1, precision=hp) + model.b1, 0.0)
    h2 = jnp.maximum(jnp.dot(h1, model.w2, precision=hp) + model.b2, 0.0)
    return jnp.dot(h2, model.w3, precision=hp) + model.b3


if __name__ == "__main__":
    key = jax.random.PRNGKey(0)
    k_x, k_params = jax.random.split(key)

    # Small input consistent with the module: C must be 512 so that
    # C * 7 * 7 == 25088; spatial 14 exercises the (2x2 -> 1) adaptive pool.
    x = jax.random.normal(k_x, (2, 512, 14, 14), dtype=jnp.float32)

    model = Classifier1(num_class=152, key=k_params)

    logits = jax.block_until_ready(model(x))
    assert logits.shape == (2, 152), logits.shape

    ref = jax.block_until_ready(_reference_forward(x, model))
    assert jnp.all(jnp.isfinite(logits))
    assert jnp.allclose(logits, ref, rtol=2e-2, atol=2e-2), (
        float(jnp.max(jnp.abs(logits - ref))))

    print("KERNEL_OK")
</pallas_src>

<mosaic_0001>
module attributes {stable_mosaic.version = 11 : i64} {
  func.func @_pool_kernel(%arg0: i32, %arg1: memref<256x196xf32, #tpu.memory_space<vmem>>, %arg2: memref<196x49xf32, #tpu.memory_space<vmem>>, %arg3: memref<256x49xf32, #tpu.memory_space<vmem>>) attributes {dimension_semantics = [#tpu.dimension_semantics<parallel>], iteration_bounds = array<i64: 4>, scalar_prefetch = 0 : i64, scratch_operands = 0 : i64, tpu.core_type = #tpu.core_type<tc>, window_params = [{transform_indices = @transform_0, window_bounds = array<i64: 256, 196>}, {pipeline_mode = #tpu.pipeline_mode<synchronous>, transform_indices = @transform_1, window_bounds = array<i64: 196, 49>}, {transform_indices = @transform_2, window_bounds = array<i64: 256, 49>}]} {
    %c0 = arith.constant 0 : index
    %c0_0 = arith.constant 0 : index
    %0 = vector.load %arg1[%c0, %c0_0] : memref<256x196xf32, #tpu.memory_space<vmem>>, vector<256x196xf32>
    %c0_1 = arith.constant 0 : index
    %c0_2 = arith.constant 0 : index
    %1 = vector.load %arg2[%c0_1, %c0_2] : memref<196x49xf32, #tpu.memory_space<vmem>>, vector<196x49xf32>
    %cst = arith.constant dense<0.000000e+00> : vector<256x49xf32>
    %2 = tpu.matmul %0, %1, %cst {dimension_numbers = #tpu.dot_dimension_numbers<[1], [0], [0], [1], [0, 0, 1, 1], [], []>} : vector<256x196xf32>, vector<196x49xf32>, vector<256x49xf32> -> vector<256x49xf32>
    %c0_3 = arith.constant 0 : index
    %c0_4 = arith.constant 0 : index
    %3 = vector.load %arg3[%c0_3, %c0_4] : memref<256x49xf32, #tpu.memory_space<vmem>>, vector<256x49xf32>
    tpu.vector_store %arg3[%c0_3, %c0_4], %2 {strides = array<i32>} : memref<256x49xf32, #tpu.memory_space<vmem>>, vector<256x49xf32>,
    return
  }
  func.func @transform_0(%arg0: i32) -> (i32, i32) {
    %c0_i32 = arith.constant 0 : i32
    %c0_i32_0 = arith.constant 0 : i32
    return %arg0, %c0_i32 : i32, i32
  }
  func.func @transform_1(%arg0: i32) -> (i32, i32) {
    %c0_i32 = arith.constant 0 : i32
    %c0_i32_0 = arith.constant 0 : i32
    %c0_i32_1 = arith.constant 0 : i32
    return %c0_i32, %c0_i32_0 : i32, i32
  }
  func.func @transform_2(%arg0: i32) -> (i32, i32) {
    %c0_i32 = arith.constant 0 : i32
    %c0_i32_0 = arith.constant 0 : i32
    return %arg0, %c0_i32 : i32, i32
  }
}

</mosaic_0001>

<bundles_post_ra>
// kernel: tpu_custom_call.1
= control target key start
LH: loop header
LB: loop body
LE: loop exit
PB: predicated region body
PF: predicated region fallthrough
CT: control target
= control target key end

     0   :  { %s783_s9 = smov 0   ;;  %s1095_s0 = inlined_call_operand.vmem [shape: f32[1024,196], index: 0, kind: input, shape index: {}]   ;;  %s1096_s1 = inlined_call_operand.vmem [shape: f32[196,49], index: 1, kind: input, shape index: {}]   ;;  %s1097_s2 = inlined_call_operand.vmem [shape: f32[1024,49], index: 2, kind: output, shape index: {}]  }
   0x1 LB: > { %s654_s10 = sadd.s32 4294967295, %s765_s9   ;;  %p658_p0 = scmp.ge.s32.totalorder %s765_s9, 1  ;;  %s765_s9 = sphi %s783_s9, %s12_s9  }
   0x2   : > { %p114_p1 = scmp.lt.s32.totalorder %s765_s9, 5 }
   0x4   : > { %p115_p2 = pnand %p658_p0, %p114_p1 }
   0x5   : > { %s659_s19 = sshll.u32 (!%p115_p2), %s654_s10, 5 }
   0x6   : > { %118 = sbr.rel (%p115_p2) target bundleno = 318 (0x13e), region = 28  ;;  %p138_p3 = scmp.lt.s32.totalorder (!%p115_p2), %s659_s19, 127 }
   0xb   : > { %v229_v0 = vld [vmem:[%s1096_s1 + $0x78] sm:$0xff]  ;;  %v767_v1 = vmov 0.0   ;;  %v228_v2 = vld [vmem:[%s1096_s1 + $0x70] sm:$0xff]  ;;  %v227_v3 = vld [vmem:[%s1096_s1 + $0x68] sm:$0xff]  ;;  %vm336_vm0 = vcmask 1043456   ;;  %s1099_s19 = smov (!%p138_p3, %s659_s19), 127 }
   0xc   : > { %340 = vmatprep.subr.mxu0 %v767_v1  ;;  %700 = vmatprep.subr.mxu1 %v767_v1  ;;  %v226_v4 = vld [vmem:[%s1096_s1 + $0x60] sm:$0xff]  ;;  %v225_v5 = vld [vmem:[%s1096_s1 + $0x58] sm:$0xff]  ;;  %v224_v6 = vld [vmem:[%s1096_s1 + $0x50] sm:$0xff]  ;;  %s699_s29 = sshll.u32 %s1099_s19, 4  ;;  %vm239_vm1 = vcmask 556032   ;;  %s663_s13 = sshll.u32 %s1099_s19, 3 }
   0xd   : > { %341 = vmatpush1.msra.mxu0 %v229_v0  ;;  %725 = vmatpush1.msra.mxu1 %v229_v0  ;;  %v223_v7 = vld [vmem:[%s1096_s1 + $0x48] sm:$0xff]  ;;  %v222_v8 = vld [vmem:[%s1096_s1 + $0x40] sm:$0xff]  ;;  %v221_v9 = vld [vmem:[%s1096_s1 + $0x38] sm:$0xff]  ;;  %s917_s8 = scalar_lea.vmem %s1095_s0, %s699_s29  ;;  %s1026_s16 = scalar_lea.vmem %s1097_s2, %s663_s13  ;;  %vm565_vm2 = vcmask 400384  }
   0xe   : > { %342 = vmatprep.subr.mxu0 %v767_v1  ;;  %701 = vmatprep.subr.mxu1 %v767_v1  ;;  %v220_v10 = vld [vmem:[%s1096_s1 + $0x30] sm:$0xff]  ;;  %v219_v11 = vld [vmem:[%s1096_s1 + $0x28] sm:$0xff]  ;;  %v218_v12 = vld [vmem:[%s1096_s1 + $0x20] sm:$0xff] }
   0xf   : > { %343 = vmatpush1.msra.mxu0 %v228_v2  ;;  %726 = vmatpush1.msra.mxu1 %v228_v2  ;;  %v217_v13 = vld [vmem:[%s1096_s1 + $0x18] sm:$0xff]  ;;  %v216_v14 = vld [vmem:[%s1096_s1 + $0x10] sm:$0xff]  ;;  %v215_v15 = vld [vmem:[%s1096_s1 + $0x8] sm:$0xff] }
  0x10   : > { %344 = vmatprep.subr.mxu0 %v767_v1  ;;  %702 = vmatprep.subr.mxu1 %v767_v1  ;;  %v214_v16 = vld [vmem:[%s1096_s1] sm:$0xff]  ;;  %v237_v18 = vld [vmem:[%s1096_s1 + $0xb8] sm:$0xff]  ;;  %v236_v19 = vld [vmem:[%s1096_s1 + $0xb0] sm:$0xff] }
  0x11   : > { %345 = vmatpush1.msra.mxu0 %v227_v3  ;;  %727 = vmatpush1.msra.mxu1 %v227_v3  ;;  %v238_v17 = vld [vmem:[%s1096_s1 + $0xc0] sm:$0xf]  ;;  %v235_v20 = vld [vmem:[%s1096_s1 + $0xa8] sm:$0xff]  ;;  %v233_v22 = vld [vmem:[%s1096_s1 + $0x98] sm:$0xff] }
  0x12   : > { %346 = vmatprep.subr.mxu0 %v767_v1  ;;  %703 = vmatprep.subr.mxu1 %v767_v1  ;;  %v234_v21 = vld [vmem:[%s1096_s1 + $0xa0] sm:$0xff]  ;;  %v232_v23 = vld [vmem:[%s1096_s1 + $0x90] sm:$0xff]  ;;  %v231_v24 = vld [vmem:[%s1096_s1 + $0x88] sm:$0xff] }
  0x13   : > { %347 = vmatpush1.msra.mxu0 %v226_v4  ;;  %728 = vmatpush1.msra.mxu1 %v226_v4  ;;  %v230_v25 = vld [vmem:[%s1096_s1 + $0x80] sm:$0xff]  ;;  %v151_v26 = vld [vmem:[%s917_s8 + $0x8] sm:$0xff]  ;;  %v153_v30 = vld [vmem:[%s917_s8 + $0x18] sm:$0xff] }
  0x14   : > { %348 = vmatprep.subr.mxu0 %v767_v1  ;;  %704 = vmatprep.subr.mxu1 %v767_v1  ;;  %v183_v27 = vld [vmem:[%s917_s8 + $0x108] sm:$0xff]  ;;  %v150_v28 = vld [vmem:[%s917_s8] sm:$0xff]  ;;  %v185_v31 = vld [vmem:[%s917_s8 + $0x118] sm:$0xff] }
  0x15   : > { %349 = vmatpush1.msra.mxu0 %v225_v5  ;;  %729 = vmatpush1.msra.mxu1 %v225_v5  ;;  %v182_v29 = vld [vmem:[%s917_s8 + $0x100] sm:$0xff]  ;;  %v152_v32 = vld [vmem:[%s917_s8 + $0x10] sm:$0xff]  ;;  %v155_v34 = vld [vmem:[%s917_s8 + $0x28] sm:$0xff] }
  0x16   : > { %350 = vmatprep.subr.mxu0 %v767_v1  ;;  %705 = vmatprep.subr.mxu1 %v767_v1  ;;  %v184_v33 = vld [vmem:[%s917_s8 + $0x110] sm:$0xff]  ;;  %v187_v35 = vld [vmem:[%s917_s8 + $0x128] sm:$0xff]  ;;  %v154_v36 = vld [vmem:[%s917_s8 + $0x20] sm:$0xff] }
  0x17   : > { %351 = vmatpush1.msra.mxu0 %v224_v6  ;;  %730 = vmatpush1.msra.mxu1 %v224_v6  ;;  %v186_v37 = vld [vmem:[%s917_s8 + $0x120] sm:$0xff]  ;;  %v157_v38 = vld [vmem:[%s917_s8 + $0x38] sm:$0xff]  ;;  %v156_v40 = vld [vmem:[%s917_s8 + $0x30] sm:$0xff] }
  0x18   : > { %352 = vmatprep.subr.mxu0 %v767_v1  ;;  %706 = vmatprep.subr.mxu1 %v767_v1  ;;  %v189_v39 = vld [vmem:[%s917_s8 + $0x138] sm:$0xff]  ;;  %v188_v41 = vld [vmem:[%s917_s8 + $0x130] sm:$0xff]  ;;  %v159_v42 = vld [vmem:[%s917_s8 + $0x48] sm:$0xff] }
  0x19   : > { %353 = vmatpush1.msra.mxu0 %v223_v7  ;;  %731 = vmatpush1.msra.mxu1 %v223_v7  ;;  %v191_v43 = vld [vmem:[%s917_s8 + $0x148] sm:$0xff]  ;;  %v158_v44 = vld [vmem:[%s917_s8 + $0x40] sm:$0xff]  ;;  %v161_v46 = vld [vmem:[%s917_s8 + $0x58] sm:$0xff] }
  0x1a   : > { %354 = vmatprep.subr.mxu0 %v767_v1  ;;  %707 = vmatprep.subr.mxu1 %v767_v1  ;;  %v190_v45 = vld [vmem:[%s917_s8 + $0x140] sm:$0xff]  ;;  %v193_v47 = vld [vmem:[%s917_s8 + $0x158] sm:$0xff]  ;;  %v160_v48 = vld [vmem:[%s917_s8 + $0x50] sm:$0xff] }
  0x1b   : > { %355 = vmatpush1.msra.mxu0 %v222_v8  ;;  %732 = vmatpush1.msra.mxu1 %v222_v8  ;;  %v192_v49 = vld [vmem:[%s917_s8 + $0x150] sm:$0xff]  ;;  %v163_v50 = vld [vmem:[%s917_s8 + $0x68] sm:$0xff]  ;;  %v162_v52 = vld [vmem:[%s917_s8 + $0x60] sm:$0xff] }
  0x1c   : > { %356 = vmatprep.subr.mxu0 %v767_v1  ;;  %708 = vmatprep.subr.mxu1 %v767_v1  ;;  %v195_v51 = vld [vmem:[%s917_s8 + $0x168] sm:$0xff]  ;;  %v194_v53 = vld [vmem:[%s917_s8 + $0x160] sm:$0xff]  ;;  %v165_v54 = vld [vmem:[%s917_s8 + $0x78] sm:$0xff] }
  0x1d   : > { %357 = vmatpush1.msra.mxu0 %v221_v9  ;;  %733 = vmatpush1.msra.mxu1 %v221_v9  ;;  %v197_v55 = vld [vmem:[%s917_s8 + $0x178] sm:$0xff]  ;;  %v164_v56 = vld [vmem:[%s917_s8 + $0x70] sm:$0xff]  ;;  %v167_v58 = vld [vmem:[%s917_s8 + $0x88] sm:$0xff] }
  0x1e   : > { %358 = vmatprep.subr.mxu0 %v767_v1  ;;  %709 = vmatprep.subr.mxu1 %v767_v1  ;;  %v196_v57 = vld [vmem:[%s917_s8 + $0x170] sm:$0xff]  ;;  %v199_v59 = vld [vmem:[%s917_s8 + $0x188] sm:$0xff]  ;;  %v166_v60 = vld [vmem:[%s917_s8 + $0x80] sm:$0xff] }
  0x1f   : > { %359 = vmatpush1.msra.mxu0 %v220_v10  ;;  %734 = vmatpush1.msra.mxu1 %v220_v10  ;;  %v198_v61 = vld [vmem:[%s917_s8 + $0x180] sm:$0xff]  ;;  %v169_v62 = vld [vmem:[%s917_s8 + $0x98] sm:$0xff]  ;;  %v168_v0 = vld [vmem:[%s917_s8 + $0x90] sm:$0xff] }
  0x20   : > { %360 = vmatprep.subr.mxu0 %v767_v1  ;;  %710 = vmatprep.subr.mxu1 %v767_v1  ;;  %v201_v63 = vld [vmem:[%s917_s8 + $0x198] sm:$0xff]  ;;  %v171_v2 = vld [vmem:[%s917_s8 + $0xa8] sm:$0xff]  ;;  %v170_v4 = vld [vmem:[%s917_s8 + $0xa0] sm:$0xff] }
  0x21   : > { %361 = vmatpush1.msra.mxu0 %v219_v11  ;;  %735 = vmatpush1.msra.mxu1 %v219_v11  ;;  %v203_v3 = vld [vmem:[%s917_s8 + $0x1a8] sm:$0xff]  ;;  %v202_v5 = vld [vmem:[%s917_s8 + $0x1a0] sm:$0xff]  ;;  %v173_v6 = vld [vmem:[%s917_s8 + $0xb8] sm:$0xff] }
  0x22   : > { %362 = vmatprep.subr.mxu0 %v767_v1  ;;  %711 = vmatprep.subr.mxu1 %v767_v1  ;;  %v205_v7 = vld [vmem:[%s917_s8 + $0x1b8] sm:$0xff]  ;;  %v172_v8 = vld [vmem:[%s917_s8 + $0xb0] sm:$0xff]  ;;  %v175_v10 = vld [vmem:[%s917_s8 + $0xc8] sm:$0xff] }
  0x23   : > { %363 = vmatpush1.msra.mxu0 %v218_v12  ;;  %736 = vmatpush1.msra.mxu1 %v218_v12  ;;  %v204_v9 = vld [vmem:[%s917_s8 + $0x1b0] sm:$0xff]  ;;  %v207_v11 = vld [vmem:[%s917_s8 + $0x1c8] sm:$0xff]  ;;  %v174_v12 = vld [vmem:[%s917_s8 + $0xc0] sm:$0xff] }
  0x24   : > { %364 = vmatprep.subr.mxu0 %v767_v1  ;;  %712 = vmatprep.subr.mxu1 %v767_v1 }
  0x25   : > { %365 = vmatpush1.msra.mxu0 %v217_v13  ;;  %737 = vmatpush1.msra.mxu1 %v217_v13  ;;  %v206_v13 = vld [vmem:[%s917_s8 + $0x1c0] sm:$0xff] }
  0x26   : > { %366 = vmatprep.subr.mxu0 %v767_v1  ;;  %713 = vmatprep.subr.mxu1 %v767_v1 }
  0x27   : > { %367 = vmatpush1.msra.mxu0 %v216_v14  ;;  %738 = vmatpush1.msra.mxu1 %v216_v14  ;;  %v177_v14 = vld [vmem:[%s917_s8 + $0xd8] sm:$0xff] }
  0x28   : > { %368 = vmatprep.subr.mxu0 %v767_v1  ;;  %714 = vmatprep.subr.mxu1 %v767_v1 }
  0x29   : > { %369 = vmatpush1.msra.mxu0 %v215_v15  ;;  %739 = vmatpush1.msra.mxu1 %v215_v15  ;;  %v209_v15 = vld [vmem:[%s917_s8 + $0x1d8] sm:$0xff] }
  0x2a   : > { %370 = vmatprep.subr.mxu0 %v767_v1  ;;  %715 = vmatprep.subr.mxu1 %v767_v1 }
  0x2b   : > { %371 = vmatpush1.msra.mxu0 %v214_v16  ;;  %740 = vmatpush1.msra.mxu1 %v214_v16  ;;  %v176_v16 = vld [vmem:[%s917_s8 + $0xd0] sm:$0xff] }
  0x2c   : > { %386 = vmatprep.subr.mxu0 %v767_v1  ;;  %716 = vmatprep.subr.mxu1 %v767_v1 }
  0x2d   : > { %664 = vmatpush2.msk.msra.mxu0 %vm336_vm0, %v238_v17  ;;  %741 = vmatpush2.msk.msra.mxu1 %vm336_vm0, %v238_v17  ;;  %v208_v17 = vld [vmem:[%s917_s8 + $0x1d0] sm:$0xff] }
  0x2e   : > { %388 = vmatprep.subr.mxu0 %v767_v1  ;;  %717 = vmatprep.subr.mxu1 %v767_v1 }
  0x2f   : > { %389 = vmatpush2.msra.mxu0 %v237_v18  ;;  %742 = vmatpush2.msra.mxu1 %v237_v18  ;;  %v179_v18 = vld [vmem:[%s917_s8 + $0xe8] sm:$0xff] }
  0x30   : > { %390 = vmatprep.subr.mxu0 %v767_v1  ;;  %718 = vmatprep.subr.mxu1 %v767_v1 }
  0x31   : > { %391 = vmatpush2.msra.mxu0 %v236_v19  ;;  %743 = vmatpush2.msra.mxu1 %v236_v19  ;;  %v211_v19 = vld [vmem:[%s917_s8 + $0x1e8] sm:$0xff] }
  0x32   : > { %392 = vmatprep.subr.mxu0 %v767_v1  ;;  %719 = vmatprep.subr.mxu1 %v767_v1 }
  0x33   : > { %393 = vmatpush2.msra.mxu0 %v235_v20  ;;  %744 = vmatpush2.msra.mxu1 %v235_v20  ;;  %v178_v20 = vld [vmem:[%s917_s8 + $0xe0] sm:$0xff] }
  0x34   : > { %394 = vmatprep.subr.mxu0 %v767_v1  ;;  %720 = vmatprep.subr.mxu1 %v767_v1 }
  0x35   : > { %395 = vmatpush2.msra.mxu0 %v234_v21  ;;  %745 = vmatpush2.msra.mxu1 %v234_v21  ;;  %v210_v21 = vld [vmem:[%s917_s8 + $0x1e0] sm:$0xff] }
  0x36   : > { %396 = vmatprep.subr.mxu0 %v767_v1  ;;  %721 = vmatprep.subr.mxu1 %v767_v1 }
  0x37   : > { %397 = vmatpush2.msra.mxu0 %v233_v22  ;;  %746 = vmatpush2.msra.mxu1 %v233_v22  ;;  %v181_v22 = vld [vmem:[%s917_s8 + $0xf8] sm:$0xff] }
  0x38   : > { %398 = vmatprep.subr.mxu0 %v767_v1  ;;  %722 = vmatprep.subr.mxu1 %v767_v1 }
  0x39   : > { %399 = vmatpush2.msra.mxu0 %v232_v23  ;;  %747 = vmatpush2.msra.mxu1 %v232_v23  ;;  %v213_v23 = vld [vmem:[%s917_s8 + $0x1f8] sm:$0xff] }
  0x3a   : > { %400 = vmatprep.subr.mxu0 %v767_v1  ;;  %723 = vmatprep.subr.mxu1 %v767_v1 }
  0x3b   : > { %401 = vmatpush2.msra.mxu0 %v231_v24  ;;  %748 = vmatpush2.msra.mxu1 %v231_v24  ;;  %v180_v24 = vld [vmem:[%s917_s8 + $0xf0] sm:$0xff] }
  0x3c   : > { %402 = vmatprep.subr.mxu0 %v767_v1  ;;  %724 = vmatprep.subr.mxu1 %v767_v1  ;;  %v200_v1 = vld [vmem:[%s917_s8 + $0x190] sm:$0xff] }
  0x3d   : > { %403 = vmatpush2.msra.mxu0 %v230_v25  ;;  %749 = vmatpush2.msra.mxu1 %v230_v25  ;;  %v212_v25 = vld [vmem:[%s917_s8 + $0x1f0] sm:$0xff] }
  0x3e   : > { %665 = vmatprep.mubr.msk.f32.mxu0 %vm239_vm1, %v151_v26  ;;  %681 = vmatprep.mubr.msk.f32.mxu1 %vm239_vm1, %v183_v27 }
  0x3f   : > { %405 = vmatmul.mubr.f32.vlgmr.msra.gmra.mxu0 %v150_v28  ;;  %485 = vmatmul.mubr.f32.vlgmr.msra.gmra.mxu1 %v182_v29 }
  0x40   : > { %666 = vmatprep.mubr.msk.f32.mxu0 %vm239_vm1, %v153_v30  ;;  %682 = vmatprep.mubr.msk.f32.mxu1 %vm239_vm1, %v185_v31 }
  0x43   : > { %410 = vmatmul.mubr.f32.gmra.mxu0 %v152_v32  ;;  %490 = vmatmul.mubr.f32.gmra.mxu1 %v184_v33 }
  0x44   : > { %667 = vmatprep.mubr.msk.f32.mxu0 %vm239_vm1, %v155_v34  ;;  %683 = vmatprep.mubr.msk.f32.mxu1 %vm239_vm1, %v187_v35 }
  0x47   : > { %415 = vmatmul.mubr.f32.gmra.mxu0 %v154_v36  ;;  %495 = vmatmul.mubr.f32.gmra.mxu1 %v186_v37 }
  0x48   : > { %668 = vmatprep.mubr.msk.f32.mxu0 %vm239_vm1, %v157_v38  ;;  %684 = vmatprep.mubr.msk.f32.mxu1 %vm239_vm1, %v189_v39 }
  0x4b   : > { %420 = vmatmul.mubr.f32.gmra.mxu0 %v156_v40  ;;  %500 = vmatmul.mubr.f32.gmra.mxu1 %v188_v41 }
  0x4c   : > { %669 = vmatprep.mubr.msk.f32.mxu0 %vm239_vm1, %v159_v42  ;;  %685 = vmatprep.mubr.msk.f32.mxu1 %vm239_vm1, %v191_v43 }
  0x4f   : > { %425 = vmatmul.mubr.f32.gmra.mxu0 %v158_v44  ;;  %505 = vmatmul.mubr.f32.gmra.mxu1 %v190_v45 }
  0x50   : > { %670 = vmatprep.mubr.msk.f32.mxu0 %vm239_vm1, %v161_v46  ;;  %686 = vmatprep.mubr.msk.f32.mxu1 %vm239_vm1, %v193_v47 }
  0x53   : > { %430 = vmatmul.mubr.f32.gmra.mxu0 %v160_v48  ;;  %510 = vmatmul.mubr.f32.gmra.mxu1 %v192_v49 }
  0x54   : > { %671 = vmatprep.mubr.msk.f32.mxu0 %vm239_vm1, %v163_v50  ;;  %687 = vmatprep.mubr.msk.f32.mxu1 %vm239_vm1, %v195_v51 }
  0x57   : > { %435 = vmatmul.mubr.f32.gmra.mxu0 %v162_v52  ;;  %515 = vmatmul.mubr.f32.gmra.mxu1 %v194_v53 }
  0x58   : > { %672 = vmatprep.mubr.msk.f32.mxu0 %vm239_vm1, %v165_v54  ;;  %688 = vmatprep.mubr.msk.f32.mxu1 %vm239_vm1, %v197_v55 }
  0x5b   : > { %440 = vmatmul.mubr.f32.gmra.mxu0 %v164_v56  ;;  %520 = vmatmul.mubr.f32.gmra.mxu1 %v196_v57 }
  0x5c   : > { %673 = vmatprep.mubr.msk.f32.mxu0 %vm239_vm1, %v167_v58  ;;  %689 = vmatprep.mubr.msk.f32.mxu1 %vm239_vm1, %v199_v59 }
  0x5f   : > { %445 = vmatmul.mubr.f32.gmra.mxu0 %v166_v60  ;;  %525 = vmatmul.mubr.f32.gmra.mxu1 %v198_v61 }
  0x60   : > { %674 = vmatprep.mubr.msk.f32.mxu0 %vm239_vm1, %v169_v62  ;;  %690 = vmatprep.mubr.msk.f32.mxu1 %vm239_vm1, %v201_v63 }
  0x63   : > { %450 = vmatmul.mubr.f32.gmra.mxu0 %v168_v0  ;;  %530 = vmatmul.mubr.f32.gmra.mxu1 %v200_v1 }
  0x64   : > { %675 = vmatprep.mubr.msk.f32.mxu0 %vm239_vm1, %v171_v2  ;;  %691 = vmatprep.mubr.msk.f32.mxu1 %vm239_vm1, %v203_v3 }
  0x67   : > { %455 = vmatmul.mubr.f32.gmra.mxu0 %v170_v4  ;;  %535 = vmatmul.mubr.f32.gmra.mxu1 %v202_v5 }
  0x68   : > { %676 = vmatprep.mubr.msk.f32.mxu0 %vm239_vm1, %v173_v6  ;;  %692 = vmatprep.mubr.msk.f32.mxu1 %vm239_vm1, %v205_v7 }
  0x6b   : > { %460 = vmatmul.mubr.f32.gmra.mxu0 %v172_v8  ;;  %540 = vmatmul.mubr.f32.gmra.mxu1 %v204_v9 }
  0x6c   : > { %677 = vmatprep.mubr.msk.f32.mxu0 %vm239_vm1, %v175_v10  ;;  %693 = vmatprep.mubr.msk.f32.mxu1 %vm239_vm1, %v207_v11 }
  0x6f   : > { %465 = vmatmul.mubr.f32.gmra.mxu0 %v174_v12  ;;  %545 = vmatmul.mubr.f32.gmra.mxu1 %v206_v13 }
  0x70   : > { %678 = vmatprep.mubr.msk.f32.mxu0 %vm239_vm1, %v177_v14  ;;  %694 = vmatprep.mubr.msk.f32.mxu1 %vm239_vm1, %v209_v15 }
  0x73   : > { %470 = vmatmul.mubr.f32.gmra.mxu0 %v176_v16  ;;  %550 = vmatmul.mubr.f32.gmra.mxu1 %v208_v17 }
  0x74   : > { %679 = vmatprep.mubr.msk.f32.mxu0 %vm239_vm1, %v179_v18  ;;  %695 = vmatprep.mubr.msk.f32.mxu1 %vm239_vm1, %v211_v19 }
  0x77   : > { %475 = vmatmul.mubr.f32.gmra.mxu0 %v178_v20  ;;  %555 = vmatmul.mubr.f32.gmra.mxu1 %v210_v21 }
  0x78   : > { %680 = vmatprep.mubr.msk.f32.mxu0 %vm239_vm1, %v181_v22  ;;  %696 = vmatprep.mubr.msk.f32.mxu1 %vm239_vm1, %v213_v23 }
  0x7b   : > { %480 = vmatmul.mubr.f32.gmra.mxu0 %v180_v24  ;;  %560 = vmatmul.mubr.f32.gmra.mxu1 %v212_v25 }
  0xff   : > { %v406_v26 = vpop.f32.mrf.mxu0  ;;  %v486_v27 = vpop.f32.mrf.mxu1 }
 0x100   : > { %566 = vst.msk [vmem:[%s1026_s16] sm:$0xff] %vm565_vm2, %v406_v26  ;;  %582 = vst.msk [vmem:[%s1026_s16 + $0x80] sm:$0xff] %vm565_vm2, %v486_v27 }
 0x101   : > { %v408_v28 = vpop.f32.mrf.mxu0  ;;  %v488_v29 = vpop.f32.mrf.mxu1 }
 0x103   : > { %v411_v30 = vpop.f32.mrf.mxu0  ;;  %v491_v31 = vpop.f32.mrf.mxu1 }
 0x104   : > { %567 = vst.msk [vmem:[%s1026_s16 + $0x8] sm:$0xff] %vm565_vm2, %v411_v30  ;;  %583 = vst.msk [vmem:[%s1026_s16 + $0x88] sm:$0xff] %vm565_vm2, %v491_v31 }
 0x105   : > { %v413_v32 = vpop.f32.mrf.mxu0  ;;  %v493_v33 = vpop.f32.mrf.mxu1 }
 0x107   : > { %v416_v34 = vpop.f32.mrf.mxu0  ;;  %v496_v35 = vpop.f32.mrf.mxu1 }
 0x108   : > { %568 = vst.msk [vmem:[%s1026_s16 + $0x10] sm:$0xff] %vm565_vm2, %v416_v34  ;;  %584 = vst.msk [vmem:[%s1026_s16 + $0x90] sm:$0xff] %vm565_vm2, %v496_v35 }
 0x109   : > { %v418_v36 = vpop.f32.mrf.mxu0  ;;  %v498_v37 = vpop.f32.mrf.mxu1 }
 0x10b   : > { %v421_v38 = vpop.f32.mrf.mxu0  ;;  %v501_v39 = vpop.f32.mrf.mxu1 }
 0x10c   : > { %569 = vst.msk [vmem:[%s1026_s16 + $0x18] sm:$0xff] %vm565_vm2, %v421_v38  ;;  %585 = vst.msk [vmem:[%s1026_s16 + $0x98] sm:$0xff] %vm565_vm2, %v501_v39 }
 0x10d   : > { %v423_v40 = vpop.f32.mrf.mxu0  ;;  %v503_v41 = vpop.f32.mrf.mxu1 }
 0x10f   : > { %v426_v42 = vpop.f32.mrf.mxu0  ;;  %v506_v43 = vpop.f32.mrf.mxu1 }
 0x110   : > { %570 = vst.msk [vmem:[%s1026_s16 + $0x20] sm:$0xff] %vm565_vm2, %v426_v42  ;;  %586 = vst.msk [vmem:[%s1026_s16 + $0xa0] sm:$0xff] %vm565_vm2, %v506_v43 }
 0x111   : > { %v428_v44 = vpop.f32.mrf.mxu0  ;;  %v508_v45 = vpop.f32.mrf.mxu1 }
 0x113   : > { %v431_v46 = vpop.f32.mrf.mxu0  ;;  %v511_v47 = vpop.f32.mrf.mxu1 }
 0x114   : > { %571 = vst.msk [vmem:[%s1026_s16 + $0x28] sm:$0xff] %vm565_vm2, %v431_v46  ;;  %587 = vst.msk [vmem:[%s1026_s16 + $0xa8] sm:$0xff] %vm565_vm2, %v511_v47 }
 0x115   : > { %v433_v48 = vpop.f32.mrf.mxu0  ;;  %v513_v49 = vpop.f32.mrf.mxu1 }
 0x117   : > { %v436_v50 = vpop.f32.mrf.mxu0  ;;  %v516_v51 = vpop.f32.mrf.mxu1 }
 0x118   : > { %572 = vst.msk [vmem:[%s1026_s16 + $0x30] sm:$0xff] %vm565_vm2, %v436_v50  ;;  %588 = vst.msk [vmem:[%s1026_s16 + $0xb0] sm:$0xff] %vm565_vm2, %v516_v51 }
 0x119   : > { %v438_v52 = vpop.f32.mrf.mxu0  ;;  %v518_v53 = vpop.f32.mrf.mxu1 }
 0x11b   : > { %v441_v54 = vpop.f32.mrf.mxu0  ;;  %v521_v55 = vpop.f32.mrf.mxu1 }
 0x11c   : > { %573 = vst.msk [vmem:[%s1026_s16 + $0x38] sm:$0xff] %vm565_vm2, %v441_v54  ;;  %589 = vst.msk [vmem:[%s1026_s16 + $0xb8] sm:$0xff] %vm565_vm2, %v521_v55 }
 0x11d   : > { %v443_v56 = vpop.f32.mrf.mxu0  ;;  %v523_v57 = vpop.f32.mrf.mxu1 }
 0x11f   : > { %v446_v58 = vpop.f32.mrf.mxu0  ;;  %v526_v59 = vpop.f32.mrf.mxu1 }
 0x120   : > { %574 = vst.msk [vmem:[%s1026_s16 + $0x40] sm:$0xff] %vm565_vm2, %v446_v58  ;;  %590 = vst.msk [vmem:[%s1026_s16 + $0xc0] sm:$0xff] %vm565_vm2, %v526_v59 }
 0x121   : > { %v448_v60 = vpop.f32.mrf.mxu0  ;;  %v528_v61 = vpop.f32.mrf.mxu1 }
 0x123   : > { %v451_v62 = vpop.f32.mrf.mxu0  ;;  %v531_v63 = vpop.f32.mrf.mxu1 }
 0x124   : > { %575 = vst.msk [vmem:[%s1026_s16 + $0x48] sm:$0xff] %vm565_vm2, %v451_v62  ;;  %591 = vst.msk [vmem:[%s1026_s16 + $0xc8] sm:$0xff] %vm565_vm2, %v531_v63 }
 0x125   : > { %v453_v0 = vpop.f32.mrf.mxu0  ;;  %v533_v1 = vpop.f32.mrf.mxu1 }
 0x127   : > { %v456_v2 = vpop.f32.mrf.mxu0  ;;  %v536_v3 = vpop.f32.mrf.mxu1 }
 0x128   : > { %576 = vst.msk [vmem:[%s1026_s16 + $0x50] sm:$0xff] %vm565_vm2, %v456_v2  ;;  %592 = vst.msk [vmem:[%s1026_s16 + $0xd0] sm:$0xff] %vm565_vm2, %v536_v3 }
 0x129   : > { %v458_v4 = vpop.f32.mrf.mxu0  ;;  %v538_v5 = vpop.f32.mrf.mxu1 }
 0x12b   : > { %v461_v6 = vpop.f32.mrf.mxu0  ;;  %v541_v7 = vpop.f32.mrf.mxu1 }
 0x12c   : > { %577 = vst.msk [vmem:[%s1026_s16 + $0x58] sm:$0xff] %vm565_vm2, %v461_v6  ;;  %593 = vst.msk [vmem:[%s1026_s16 + $0xd8] sm:$0xff] %vm565_vm2, %v541_v7 }
 0x12d   : > { %v463_v8 = vpop.f32.mrf.mxu0  ;;  %v543_v9 = vpop.f32.mrf.mxu1 }
 0x12f   : > { %v466_v10 = vpop.f32.mrf.mxu0  ;;  %v546_v11 = vpop.f32.mrf.mxu1 }
 0x130   : > { %578 = vst.msk [vmem:[%s1026_s16 + $0x60] sm:$0xff] %vm565_vm2, %v466_v10  ;;  %594 = vst.msk [vmem:[%s1026_s16 + $0xe0] sm:$0xff] %vm565_vm2, %v546_v11 }
 0x131   : > { %v468_v12 = vpop.f32.mrf.mxu0  ;;  %v548_v13 = vpop.f32.mrf.mxu1 }
 0x133   : > { %v471_v14 = vpop.f32.mrf.mxu0  ;;  %v551_v15 = vpop.f32.mrf.mxu1 }
 0x134   : > { %579 = vst.msk [vmem:[%s1026_s16 + $0x68] sm:$0xff] %vm565_vm2, %v471_v14  ;;  %595 = vst.msk [vmem:[%s1026_s16 + $0xe8] sm:$0xff] %vm565_vm2, %v551_v15 }
 0x135   : > { %v473_v16 = vpop.f32.mrf.mxu0  ;;  %v553_v17 = vpop.f32.mrf.mxu1 }
 0x137   : > { %v476_v18 = vpop.f32.mrf.mxu0  ;;  %v556_v19 = vpop.f32.mrf.mxu1 }
 0x138   : > { %580 = vst.msk [vmem:[%s1026_s16 + $0x70] sm:$0xff] %vm565_vm2, %v476_v18  ;;  %596 = vst.msk [vmem:[%s1026_s16 + $0xf0] sm:$0xff] %vm565_vm2, %v556_v19 }
 0x139   : > { %v478_v20 = vpop.f32.mrf.mxu0  ;;  %v558_v21 = vpop.f32.mrf.mxu1 }
 0x13b   : > { %v481_v22 = vpop.f32.mrf.mxu0  ;;  %v561_v23 = vpop.f32.mrf.mxu1 }
 0x13c   : > { %581 = vst.msk [vmem:[%s1026_s16 + $0x78] sm:$0xff] %vm565_vm2, %v481_v22  ;;  %597 = vst.msk [vmem:[%s1026_s16 + $0xf8] sm:$0xff] %vm565_vm2, %v561_v23 }
 0x13d   : > { %v483_v24 = vpop.f32.mrf.mxu0  ;;  %v563_v25 = vpop.f32.mrf.mxu1 }
 0x13e PF: > { %s12_s9 = sadd.s32 1, %s765_s9  }
 0x13f   : > { %p9_p4 = scmp.ge.s32.totalorder %s12_s9, 6  }
 0x141   :  { %11 = sbr.rel (!%p9_p4) target bundleno = 1 (0x1), region = 58 }

</bundles_post_ra>
